<compile_context>
chip_gen: v7x
topology: tpu7x:2x2x1
jax: 0.10.0
libtpu: 0.0.40
codegen_flags: <defaults>
</compile_context>

<pallas_src>
import jax
import jax.numpy as jnp
from jax.experimental import pallas as pl
from jax.experimental.pallas import tpu as pltpu


def _pwconv_kernel(w_ref, s_ref, b_ref, x_ref, o_ref):
    # w_ref: (tco, Cin)  raw conv weight (compute dtype)
    # s_ref: (tco, 1)    f32 BN scale = gamma / sqrt(var + eps)
    # b_ref: (tco, 1)    f32 BN bias  = beta - mean * scale
    # x_ref: (Cin, thw)  one batch element's spatial tile (leading N squeezed)
    # o_ref: (tco, thw)
    acc = jnp.dot(w_ref[...], x_ref[...], preferred_element_type=jnp.float32)
    y = acc * s_ref[...] + b_ref[...]                       # fused BN (eval), f32
    o_ref[...] = jnp.maximum(y, 0.0).astype(o_ref.dtype)    # fused ReLU


def _vmem_budgets():
    """(tile_budget_bytes, vmem_limit_bytes) chosen per TPU generation."""
    try:
        kind = jax.devices()[0].device_kind.lower()
    except Exception:
        kind = ""
    mib = 1024 * 1024
    if any(v in kind for v in ("v4", "v5", "v6")):   # 128 MiB physical VMEM
        return 64 * mib, 96 * mib
    # v7x (64 MiB physical VMEM) or unknown generation: stay conservative.
    return 36 * mib, 48 * mib


def _choose_cout_tile(cout):
    if cout >= 512:
        if cout % 256 == 0:
            return 256
        if cout % 128 == 0:
            return 128
    return cout


def _choose_hw_tile(hw, cin, tco, itemsize, budget_bytes, weight_bufs=1):
    """Largest 128-multiple spatial tile whose full per-step footprint fits."""
    if hw <= 128:
        return hw
    fixed = weight_bufs * tco * cin * itemsize        # resident weight block(s)
    fixed += 2 * 2 * tco * 128 * 4                    # scale + bias (lane-padded)
    per_col = 2 * (cin + tco) * itemsize + 4 * tco    # dbl-buf x/out + f32 acc
    avail = max(budget_bytes - fixed, per_col * 128)
    t = (avail // per_col) // 128 * 128
    t = int(max(128, min(t, 32768)))
    if t >= hw:
        return hw                                      # full extent is legal
    # Prefer a 128-multiple divisor of hw: removes the ragged last block whose
    # garbage columns would otherwise waste DMA bandwidth and MXU work.
    d = t
    while d >= 128:
        if hw % d == 0:
            return d
        d -= 128
    return t


def pwconv_forward(x_nchw, conv_weight, bn_gamma, bn_beta, bn_mean, bn_var,
                   eps=1e-5, hw_tile=None, compute_dtype=None):
    """x_nchw: (N, Cin, H, W); conv_weight: (Cout, Cin, 1, 1) (PyTorch layout)."""
    N, Cin, H, W = x_nchw.shape
    Cout = conv_weight.shape[0]
    HW = H * W
    if compute_dtype is None:
        compute_dtype = x_nchw.dtype
    compute_dtype = jnp.dtype(compute_dtype)
    itemsize = compute_dtype.itemsize

    # BatchNorm (inference running stats): per-channel f32 scale and bias,
    # applied in the kernel epilogue (keeps precision even when streaming bf16).
    scale = (bn_gamma.astype(jnp.float32)
             / jnp.sqrt(bn_var.astype(jnp.float32) + eps))            # (Cout,)
    bias = bn_beta.astype(jnp.float32) - bn_mean.astype(jnp.float32) * scale
    scale2 = scale.reshape(Cout, 1)                                    # f32
    bias2 = bias.reshape(Cout, 1)                                      # f32

    w_mat = conv_weight.reshape(Cout, Cin).astype(compute_dtype)       # (Cout, Cin)

    # NCHW-native view: (N, Cin, H*W) -- free reshape, no transpose / no pad.
    x3 = x_nchw.reshape(N, Cin, HW).astype(compute_dtype)

    tile_budget, vmem_limit = _vmem_budgets()
    tco = _choose_cout_tile(Cout)
    n_co = Cout // tco

    if hw_tile is None:
        thw = _choose_hw_tile(HW, Cin, tco, itemsize, tile_budget)
    else:
        thw = HW if hw_tile >= HW else max(128, (hw_tile // 128) * 128)
    n_hw = pl.cdiv(HW, thw)        # ragged last block: Pallas masks the store

    # v7x has 2 TensorCores: avoid a single-block grid when we can split HW.
    if N * n_co * n_hw < 2 and HW >= 256:
        half = (HW + 1) // 2
        split = max(128, ((half + 127) // 128) * 128)
        if split < HW:
            thw = split
            n_hw = pl.cdiv(HW, thw)

    def call(single_buffer_consts):
        const_kw = dict(pipeline_mode=pl.Buffered(1)) if single_buffer_consts else {}
        in_specs = [
            pl.BlockSpec((tco, Cin), lambda n, co, j: (co, 0), **const_kw),  # weight
            pl.BlockSpec((tco, 1), lambda n, co, j: (co, 0), **const_kw),    # scale
            pl.BlockSpec((tco, 1), lambda n, co, j: (co, 0), **const_kw),    # bias
            pl.BlockSpec((None, Cin, thw), lambda n, co, j: (n, 0, j)),      # x
        ]
        out_spec = pl.BlockSpec((None, tco, thw), lambda n, co, j: (n, co, j))
        return pl.pallas_call(
            _pwconv_kernel,
            out_shape=jax.ShapeDtypeStruct((N, Cout, HW), compute_dtype),
            grid_spec=pltpu.PrefetchScalarGridSpec(
                num_scalar_prefetch=0,
                grid=(N, n_co, n_hw),        # HW tiles fastest -> contiguous HBM
                in_specs=in_specs,
                out_specs=out_spec,
            ),
            compiler_params=pltpu.CompilerParams(
                dimension_semantics=("parallel", "parallel", "parallel"),
                vmem_limit_bytes=vmem_limit,
            ),
        )(w_mat, scale2, bias2, x3)

    try:
        out3 = call(True)        # single-buffered constant weight/scale/bias
    except Exception:
        out3 = call(False)       # fallback: default double buffering

    return out3.reshape(N, Cout, H, W)


def pwconv_reference(x_nchw, conv_weight, bn_gamma, bn_beta, bn_mean, bn_var,
                     eps=1e-5):
    w_mat = conv_weight.reshape(conv_weight.shape[0], -1).astype(jnp.float32)
    y = jnp.einsum('nchw,oc->nohw', x_nchw.astype(jnp.float32), w_mat)
    scale = bn_gamma / jnp.sqrt(bn_var + eps)
    bias = bn_beta - bn_mean * scale
    y = y * scale[None, :, None, None] + bias[None, :, None, None]
    return jnp.maximum(y, 0.0)


if __name__ == "__main__":
    key = jax.random.PRNGKey(0)
    k_x, k_w, k_g, k_b, k_m, k_v, k_x2 = jax.random.split(key, 7)

    # ---- test 1: f32, HW a multiple of 128 (full-extent spatial tile) -------
    N, Cin, H, W = 2, 4, 16, 16
    Cout = 8
    x = jax.random.normal(k_x, (N, Cin, H, W), dtype=jnp.float32)
    conv_w = jax.random.normal(k_w, (Cout, Cin, 1, 1), dtype=jnp.float32) * 0.1
    bn_gamma = 1.0 + 0.1 * jax.random.normal(k_g, (Cout,), dtype=jnp.float32)
    bn_beta = 0.1 * jax.random.normal(k_b, (Cout,), dtype=jnp.float32)
    bn_mean = 0.1 * jax.random.normal(k_m, (Cout,), dtype=jnp.float32)
    bn_var = 1.0 + 0.1 * jax.random.uniform(k_v, (Cout,), dtype=jnp.float32)

    out = pwconv_forward(x, conv_w, bn_gamma, bn_beta, bn_mean, bn_var)
    out = jax.block_until_ready(out)
    ref = pwconv_reference(x, conv_w, bn_gamma, bn_beta, bn_mean, bn_var)
    assert out.shape == (N, Cout, H, W)
    assert jnp.allclose(out, ref, atol=1e-5, rtol=1e-5)

    # ---- test 2: ragged HW path (16*13 = 208 with a forced 128-col tile) ----
    H2, W2 = 16, 13
    x2 = jax.random.normal(k_x2, (1, Cin, H2, W2), dtype=jnp.float32)
    out2 = pwconv_forward(x2, conv_w, bn_gamma, bn_beta, bn_mean, bn_var,
                          hw_tile=128)
    out2 = jax.block_until_ready(out2)
    ref2 = pwconv_reference(x2, conv_w, bn_gamma, bn_beta, bn_mean, bn_var)
    assert out2.shape == (1, Cout, H2, W2)
    assert jnp.allclose(out2, ref2, atol=1e-5, rtol=1e-5)

    # ---- test 3: bf16 streaming path (f32 accumulation + f32 BN epilogue) ---
    out3 = pwconv_forward(x, conv_w, bn_gamma, bn_beta, bn_mean, bn_var,
                          compute_dtype=jnp.bfloat16)
    out3 = jax.block_until_ready(out3)
    assert out3.dtype == jnp.bfloat16
    assert jnp.allclose(out3.astype(jnp.float32), ref, atol=5e-2, rtol=5e-2)

    print("KERNEL_OK")
</pallas_src>

<mosaic_0001>
module attributes {stable_mosaic.version = 11 : i64} {
  func.func @_pwconv_kernel(%arg0: i32, %arg1: i32, %arg2: i32, %arg3: memref<8x4xf32, #tpu.memory_space<vmem>>, %arg4: memref<8x1xf32, #tpu.memory_space<vmem>>, %arg5: memref<8x1xf32, #tpu.memory_space<vmem>>, %arg6: memref<1x4x256xf32, #tpu.memory_space<vmem>>, %arg7: memref<1x8x256xf32, #tpu.memory_space<vmem>>) attributes {dimension_semantics = [#tpu.dimension_semantics<parallel>, #tpu.dimension_semantics<parallel>, #tpu.dimension_semantics<parallel>], iteration_bounds = array<i64: 2, 1, 1>, scalar_prefetch = 0 : i64, scratch_operands = 0 : i64, tpu.core_type = #tpu.core_type<tc>, window_params = [{pipeline_mode = #tpu.pipeline_mode<synchronous>, transform_indices = @transform_0, window_bounds = array<i64: 8, 4>}, {pipeline_mode = #tpu.pipeline_mode<synchronous>, transform_indices = @transform_1, window_bounds = array<i64: 8, 1>}, {pipeline_mode = #tpu.pipeline_mode<synchronous>, transform_indices = @transform_2, window_bounds = array<i64: 8, 1>}, {transform_indices = @transform_3, window_bounds = array<i64: 1, 4, 256>}, {transform_indices = @transform_4, window_bounds = array<i64: 1, 8, 256>}]} {
    %c0 = arith.constant 0 : index
    %c0_0 = arith.constant 0 : index
    %0 = vector.load %arg3[%c0, %c0_0] : memref<8x4xf32, #tpu.memory_space<vmem>>, vector<8x4xf32>
    %c0_1 = arith.constant 0 : index
    %c0_2 = arith.constant 0 : index
    %c0_3 = arith.constant 0 : index
    %1 = vector.load %arg6[%c0_1, %c0_2, %c0_3] : memref<1x4x256xf32, #tpu.memory_space<vmem>>, vector<1x4x256xf32>
    %2 = vector.shape_cast %1 : vector<1x4x256xf32> to vector<4x256xf32>
    %cst = arith.constant dense<0.000000e+00> : vector<8x256xf32>
    %3 = tpu.matmul %0, %2, %cst {dimension_numbers = #tpu.dot_dimension_numbers<[1], [0], [0], [1], [0, 0, 1, 1], [], []>} : vector<8x4xf32>, vector<4x256xf32>, vector<8x256xf32> -> vector<8x256xf32>
    %c0_4 = arith.constant 0 : index
    %c0_5 = arith.constant 0 : index
    %4 = vector.load %arg4[%c0_4, %c0_5] : memref<8x1xf32, #tpu.memory_space<vmem>>, vector<8x1xf32>
    %5 = vector.broadcast %4 : vector<8x1xf32> to vector<8x256xf32>
    %6 = arith.mulf %3, %5 : vector<8x256xf32>
    %c0_6 = arith.constant 0 : index
    %c0_7 = arith.constant 0 : index
    %7 = vector.load %arg5[%c0_6, %c0_7] : memref<8x1xf32, #tpu.memory_space<vmem>>, vector<8x1xf32>
    %8 = vector.broadcast %7 : vector<8x1xf32> to vector<8x256xf32>
    %9 = arith.addf %6, %8 : vector<8x256xf32>
    %cst_8 = arith.constant 0.000000e+00 : f32
    %10 = vector.broadcast %cst_8 : f32 to vector<8x256xf32>
    %11 = arith.maximumf %9, %10 : vector<8x256xf32>
    %c0_9 = arith.constant 0 : index
    %c0_10 = arith.constant 0 : index
    %c0_11 = arith.constant 0 : index
    %12 = vector.load %arg7[%c0_9, %c0_10, %c0_11] : memref<1x8x256xf32, #tpu.memory_space<vmem>>, vector<1x8x256xf32>
    %13 = vector.shape_cast %12 : vector<1x8x256xf32> to vector<8x256xf32>
    %14 = vector.shape_cast %11 : vector<8x256xf32> to vector<1x8x256xf32>
    tpu.vector_store %arg7[%c0_9, %c0_10, %c0_11], %14 {strides = array<i32>} : memref<1x8x256xf32, #tpu.memory_space<vmem>>, vector<1x8x256xf32>,
    return
  }
  func.func @transform_0(%arg0: i32, %arg1: i32, %arg2: i32) -> (i32, i32) {
    %c0_i32 = arith.constant 0 : i32
    %c0_i32_0 = arith.constant 0 : i32
    return %arg1, %c0_i32 : i32, i32
  }
  func.func @transform_1(%arg0: i32, %arg1: i32, %arg2: i32) -> (i32, i32) {
    %c0_i32 = arith.constant 0 : i32
    %c0_i32_0 = arith.constant 0 : i32
    return %arg1, %c0_i32 : i32, i32
  }
  func.func @transform_2(%arg0: i32, %arg1: i32, %arg2: i32) -> (i32, i32) {
    %c0_i32 = arith.constant 0 : i32
    %c0_i32_0 = arith.constant 0 : i32
    return %arg1, %c0_i32 : i32, i32
  }
  func.func @transform_3(%arg0: i32, %arg1: i32, %arg2: i32) -> (i32, i32, i32) {
    %c0_i32 = arith.constant 0 : i32
    %c0_i32_0 = arith.constant 0 : i32
    return %arg0, %c0_i32, %arg2 : i32, i32, i32
  }
  func.func @transform_4(%arg0: i32, %arg1: i32, %arg2: i32) -> (i32, i32, i32) {
    %c0_i32 = arith.constant 0 : i32
    return %arg0, %arg1, %arg2 : i32, i32, i32
  }
}

module attributes {stable_mosaic.version = 11 : i64} {
  func.func @_pwconv_kernel(%arg0: i32, %arg1: i32, %arg2: i32, %arg3: memref<8x4xf32, #tpu.memory_space<vmem>>, %arg4: memref<8x1xf32, #tpu.memory_space<vmem>>, %arg5: memref<8x1xf32, #tpu.memory_space<vmem>>, %arg6: memref<1x4x256xf32, #tpu.memory_space<vmem>>, %arg7: memref<1x8x256xf32, #tpu.memory_space<vmem>>) attributes {dimension_semantics = [#tpu.dimension_semantics<parallel>, #tpu.dimension_semantics<parallel>, #tpu.dimension_semantics<parallel>], iteration_bounds = array<i64: 2, 1, 1>, scalar_prefetch = 0 : i64, scratch_operands = 0 : i64, tpu.core_type = #tpu.core_type<tc>, window_params = [{transform_indices = @transform_0, window_bounds = array<i64: 8, 4>}, {transform_indices = @transform_1, window_bounds = array<i64: 8, 1>}, {transform_indices = @transform_2, window_bounds = array<i64: 8, 1>}, {transform_indices = @transform_3, window_bounds = array<i64: 1, 4, 256>}, {transform_indices = @transform_4, window_bounds = array<i64: 1, 8, 256>}]} {
    %c0 = arith.constant 0 : index
    %c0_0 = arith.constant 0 : index
    %0 = vector.load %arg3[%c0, %c0_0] : memref<8x4xf32, #tpu.memory_space<vmem>>, vector<8x4xf32>
    %c0_1 = arith.constant 0 : index
    %c0_2 = arith.constant 0 : index
    %c0_3 = arith.constant 0 : index
    %1 = vector.load %arg6[%c0_1, %c0_2, %c0_3] : memref<1x4x256xf32, #tpu.memory_space<vmem>>, vector<1x4x256xf32>
    %2 = vector.shape_cast %1 : vector<1x4x256xf32> to vector<4x256xf32>
    %cst = arith.constant dense<0.000000e+00> : vector<8x256xf32>
    %3 = tpu.matmul %0, %2, %cst {dimension_numbers = #tpu.dot_dimension_numbers<[1], [0], [0], [1], [0, 0, 1, 1], [], []>} : vector<8x4xf32>, vector<4x256xf32>, vector<8x256xf32> -> vector<8x256xf32>
    %c0_4 = arith.constant 0 : index
    %c0_5 = arith.constant 0 : index
    %4 = vector.load %arg4[%c0_4, %c0_5] : memref<8x1xf32, #tpu.memory_space<vmem>>, vector<8x1xf32>
    %5 = vector.broadcast %4 : vector<8x1xf32> to vector<8x256xf32>
    %6 = arith.mulf %3, %5 : vector<8x256xf32>
    %c0_6 = arith.constant 0 : index
    %c0_7 = arith.constant 0 : index
    %7 = vector.load %arg5[%c0_6, %c0_7] : memref<8x1xf32, #tpu.memory_space<vmem>>, vector<8x1xf32>
    %8 = vector.broadcast %7 : vector<8x1xf32> to vector<8x256xf32>
    %9 = arith.addf %6, %8 : vector<8x256xf32>
    %cst_8 = arith.constant 0.000000e+00 : f32
    %10 = vector.broadcast %cst_8 : f32 to vector<8x256xf32>
    %11 = arith.maximumf %9, %10 : vector<8x256xf32>
    %c0_9 = arith.constant 0 : index
    %c0_10 = arith.constant 0 : index
    %c0_11 = arith.constant 0 : index
    %12 = vector.load %arg7[%c0_9, %c0_10, %c0_11] : memref<1x8x256xf32, #tpu.memory_space<vmem>>, vector<1x8x256xf32>
    %13 = vector.shape_cast %12 : vector<1x8x256xf32> to vector<8x256xf32>
    %14 = vector.shape_cast %11 : vector<8x256xf32> to vector<1x8x256xf32>
    tpu.vector_store %arg7[%c0_9, %c0_10, %c0_11], %14 {strides = array<i32>} : memref<1x8x256xf32, #tpu.memory_space<vmem>>, vector<1x8x256xf32>,
    return
  }
  func.func @transform_0(%arg0: i32, %arg1: i32, %arg2: i32) -> (i32, i32) {
    %c0_i32 = arith.constant 0 : i32
    %c0_i32_0 = arith.constant 0 : i32
    return %arg1, %c0_i32 : i32, i32
  }
  func.func @transform_1(%arg0: i32, %arg1: i32, %arg2: i32) -> (i32, i32) {
    %c0_i32 = arith.constant 0 : i32
    %c0_i32_0 = arith.constant 0 : i32
    return %arg1, %c0_i32 : i32, i32
  }
  func.func @transform_2(%arg0: i32, %arg1: i32, %arg2: i32) -> (i32, i32) {
    %c0_i32 = arith.constant 0 : i32
    %c0_i32_0 = arith.constant 0 : i32
    return %arg1, %c0_i32 : i32, i32
  }
  func.func @transform_3(%arg0: i32, %arg1: i32, %arg2: i32) -> (i32, i32, i32) {
    %c0_i32 = arith.constant 0 : i32
    %c0_i32_0 = arith.constant 0 : i32
    return %arg0, %c0_i32, %arg2 : i32, i32, i32
  }
  func.func @transform_4(%arg0: i32, %arg1: i32, %arg2: i32) -> (i32, i32, i32) {
    %c0_i32 = arith.constant 0 : i32
    return %arg0, %arg1, %arg2 : i32, i32, i32
  }
}

</mosaic_0001>

<bundles_post_ra>
// kernel: tpu_custom_call.1
= control target key start
LH: loop header
LB: loop body
LE: loop exit
PB: predicated region body
PF: predicated region fallthrough
CT: control target
= control target key end

     0   :  { %9 = vsyncpa [#allocation3], 0  ;;  %s845_s0 = inlined_call_operand.vmem [shape: f32[8,4], index: 0, kind: input, shape index: {}]   ;;  %s846_s1 = inlined_call_operand.vmem [shape: f32[8,1], index: 1, kind: input, shape index: {}]   ;;  %s847_s2 = inlined_call_operand.vmem [shape: f32[8,1], index: 2, kind: input, shape index: {}]   ;;  %s848_s3 = inlined_call_operand.vmem [shape: f32[2,4,256], index: 3, kind: input, shape index: {}]   ;;  %s849_s4 = inlined_call_operand.hbm [shape: f32[2,8,256], index: 4, kind: output, shape index: {}]  }
   0x1   :  { %11 = vsyncpa [#allocation3 + $0x1], 0  ;;  %s724_s15 = smov 0   ;;  %s726_s16 = smov 0  }
   0x2   :  { %s728_s17 = smov 0   ;;  %s730_s18 = smov 0  }
   0x3   :  { %s732_s19 = smov 0   ;;  %s734_s20 = smov 0  }
   0x4 LB: > { %s536_s21 = sadd.s32 4294967295, %s694_s20   ;;  %s537_s22 = sadd.s32 4294967294, %s694_s20   ;;  %s694_s20 = sphi %s734_s20, %s17_s20   ;;  %s690_s19 = sphi %s732_s19, %s856_s19   ;;  %s686_s18 = sphi %s730_s18, %s855_s18   ;;  %s682_s17 = sphi %s728_s17, %s854_s17   ;;  %s678_s16 = sphi %s726_s16, %s853_s16   ;;  %s674_s15 = sphi %s724_s15, %s852_s15  }
   0x5   : > { %s36_s23 = sadd.s32 1, %s690_s19  ;;  %s153_s24 = sadd.s32 1, %s682_s17 }
   0x6   : > { %p38_p0 = scmp.ge.s32.totalorder %s36_s23, 2  ;;  %p163_p1 = scmp.ne.s32.totalorder %s682_s17, %s678_s16 }
   0x7   : > { %p164_p2 = scmp.eq.s32.totalorder %s536_s21, 1  ;;  %p169_p3 = scmp.ne.s32.totalorder %s678_s16, %s674_s15 }
   0x8   : > { %s858_s23 = smov (%p38_p0, %s36_s23), 0  ;;  %p170_p5 = scmp.eq.s32.totalorder %s537_s22, 1 }
   0x9   : > { %p764_p4 = por %p164_p2, %p163_p1  ;;  %s146_s26 = ssub.s32 %s690_s19, %s858_s23 }
   0xa   : > { %p543_p6 = scmp.ge.s32.totalorder %s694_s20, 1  ;;  %p151_p7 = scmp.eq.s32.totalorder %s146_s26, 0 }
   0xb   : > { %p771_p8 = por %p170_p5, %p169_p3  ;;  %p222_p9 = scmp.lt.s32.totalorder %s694_s20, 3 }
   0xc   : > { %s777_s28 = scalar_select %p151_p7, %s682_s17, %s153_s24  }
   0xd   : > { %p223_p10 = pnand %p543_p6, %p222_p9 }
   0xe   : > { %p277_p11 = scmp.lt.s32.totalorder (!%p223_p10), %s686_s18, 1  ;;  %v696_v0 = vmov (!%p223_p10), 0.0   ;;  %v697_v1 = vmov (!%p223_p10), 0   ;;  %v371_v2 = vld [vmem:[%s846_s1] sm:$0xff] (!%p223_p10)  ;;  %vm295_vm0 = vcmask (!%p223_p10), 1043456   ;;  %vm291_vm1 = vcmask (!%p223_p10), 31744  }
   0xf   : > { %226 = sbr.rel (%p223_p10) target bundleno = 264 (0x108), region = 36  ;;  %364 = vmatprep.mubr.f32.mxu0 (!%p223_p10), %v696_v0  ;;  %614 = vset.pattern.permute.xlu0 (!%p223_p10), %v697_v1  ;;  %v379_v3 = vld [vmem:[%s847_s2] sm:$0xff] (!%p223_p10)  ;;  %s261_s14 = sand.u32 (!%p223_p10), 1, %s678_s16  }
  0x10   : > { %374 = vperm.xlu0 (!%p223_p10), %614, %v371_v2   ;;  %v287_v6 = vld [vmem:[%s845_s0] sm:$0xff] (!%p223_p10)  ;;  %s544_s21 = sshll.u32 (!%p223_p10), %s261_s14, 4  ;;  %s556_s22 = sshll.u32 (!%p223_p10), %s686_s18, 8 }
  0x11   : > { %s263_s24 = scalar_lea.vmem (!%p223_p10), [#allocation2], %s544_s21  ;;  %s392_s6 = scalar_lea.sflag (!%p223_p10), [#allocation3], %s261_s14 }
  0x12   : > { %s410_s26 = sshll.u32 (!%p223_p10), %s263_s24, 4  ;;  %s800_s26 = int_to_ptr.vmem [resolvable:$true] %s410_s26 }
  0x13   : > { %s616_s7 = scalar_lea.vmem (!%p223_p10), %s800_s26, 256 }
  0x14   : > { %382 = vperm.xlu0 (!%p223_p10), %614, %v379_v3   ;;  %p617_p12 = scmp.ne.s32.totalorder (!%p223_p10), %s800_s26, %s616_s7 }
  0x16   : > { %s278_s5 = scalar_select %p277_p11, %s686_s18, 1 }
  0x17   : > { %p618_p13 = pnand %p617_p12, %p764_p4  ;;  %s698_s18 = smov [#allocation2]  }
  0x18   : > { %s555_s8 = sshll.u32 %s278_s5, 3  ;;  %s798_s5 = scalar_lea.hbm %s849_s4, %s556_s22 }
  0x19   : > { %s284_s11 = scalar_lea.vmem %s848_s3, %s555_s8  ;;  %p619_p0 = pneg %p618_p13 }
  0x1a   : > { %v288_v4 = vld [vmem:[%s284_s11] sm:$0xff]  ;;  %s620_s8 = sshll.u32 %s698_s18, 4  ;;  %s621_s8 = int_to_ptr.vmem [resolvable:$false] %s620_s8 }
  0x1b   : > { %v290_v5 = vcombine.high %v288_v4, %v288_v4  ;;  %s622_s9 = scalar_lea.vmem %s621_s8, 512  ;;  %p623_p1 = scmp.lt.s32.totalorder %s800_s26, %s621_s8 }
  0x1c   : > { %p624_p2 = scmp.lt.s32.totalorder %s622_s9, %s616_s7 }
  0x1d   : > { %547 = vmatprep.subr.msk.mxu0 %vm295_vm0, %v290_v5 }
  0x1e   : > { %548 = vmatpush1.msk.msra.mxu0 %vm295_vm0, %v288_v4  ;;  %p625_p3 = por %p624_p2, %p623_p1 }
  0x1f   : > { %549 = vmatmul.mubr.msk.f32.vlgmr.msra.gmra.mrb[0].mxu0 %vm291_vm1, %v287_v6 }
  0x20   : > { %p626_p5 = pnand %p625_p3, %p619_p0 }
  0x8f   : > { %v375_v7 = vpop.permute.xlu0 %374 }
  0x93   : > { %v383_v11 = vpop.permute.xlu0 %382 }
  0xf2   : > { %v366_v8 = vpop.f32.mrb[0].mxu0 }
  0xf3   : > { %v377_v9 = vmul.f32 %v375_v7, %v366_v8  ;;  %v368_v10 = vpop.f32.mrb[1].mxu0 }
  0xf4   : > { %v378_v12 = vmul.f32 %v375_v7, %v368_v10 }
  0xf5   : > { %v385_v13 = vadd.f32 %v383_v11, %v377_v9 }
  0xf6   : > { %v386_v14 = vadd.f32 %v383_v11, %v378_v12 }
  0xf7   : > { %v387_v15 = vmax.f32 %v385_v13, 0.0 }
  0xf8   : > { %v388_v16 = vmax.f32 %v386_v14, 0.0 }
  0xf9   : > { %389 = vst [vmem:[%s263_s24] sm:$0xff] %v387_v15 }
  0xfa   : > { %390 = vst [vmem:[%s263_s24 + $0x8] sm:$0xff] %v388_v16 }
  0xfb   : > { %629 = shalt.err (!%p626_p5)
}
  0xfc   : > { %s630_s10 = scalar_lea.hbm %s798_s5, 256  ;;  %s634_s13 = scalar_lea.hbm %s849_s4, 512 }
  0xfd   : > { %p631_p6 = scmp.ne.s32.totalorder %s798_s5, %s630_s10  ;;  %p635_p10 = scmp.lt.u32.totalorder %s798_s5, %s849_s4 }
  0xfe   : > { %p636_p11 = scmp.lt.u32.totalorder %s634_s13, %s630_s10  ;;  %p638_p13 = scmp.lt.u32.totalorder %s630_s10, %s798_s5 }
  0xff   : > { %p632_p7 = pnand %p631_p6, %p764_p4 }
 0x100   : > { %p637_p12 = por %p636_p11, %p635_p10 }
 0x101   : > { %p633_p9 = pneg %p632_p7 }
 0x102   : > { %p639_p0 = por %p638_p13, %p637_p12 }
 0x104   : > { %p640_p1 = pnand %p639_p0, %p633_p9 }
 0x106   : > { %643 = shalt.err (!%p640_p1)
}
 0x107   : > { %557 = dma.vmem_to_hbm [thread:$0]  (%p764_p4), %s800_s26, 256, %s798_s5, %s392_s6  }
 0x108 PF: > { %p563_p2 = scmp.ge.s32.totalorder %s694_s20, 2  ;;  %s422_s22 = sand.u32 1, %s674_s15  }
 0x109   : > { %s423_s24 = scalar_lea.sflag [#allocation3], %s422_s22 }
 0x10a   : > { %p560_p3 = pnand %p563_p2, %p771_p8 }
 0x10c   : > { %669 = dma.done.wait (!%p560_p3), %s423_s24, 256  }
 0x10d   : > { %671 = vsyncadd (!%p560_p3), %s423_s24, 4294967040  ;;  %s17_s20 = sadd.s32 1, %s694_s20   ;;  %s852_s15 = smov %s678_s16 }
 0x10e   : > { %p14_p5 = scmp.ge.s32.totalorder %s17_s20, 4   ;;  %s853_s16 = smov %s682_s17 }
 0x10f   : > { %s854_s17 = smov %s777_s28  ;;  %s855_s18 = smov %s690_s19 }
 0x110   : > { %s856_s19 = smov %s858_s23  ;;  %16 = sbr.rel (!%p14_p5) target bundleno = 4 (0x4), region = 80 }
 0x117   :  { %428 = vsyncpa [#allocation3], 1 }
 0x118   :  { %430 = vsyncpa [#allocation3 + $0x1], 1 }

// kernel: tpu_custom_call.1
= control target key start
LH: loop header
LB: loop body
LE: loop exit
PB: predicated region body
PF: predicated region fallthrough
CT: control target
= control target key end

     0   :  { %9 = vsyncpa [#allocation3], 0  ;;  %s845_s0 = inlined_call_operand.vmem [shape: f32[8,4], index: 0, kind: input, shape index: {}]   ;;  %s846_s1 = inlined_call_operand.vmem [shape: f32[8,1], index: 1, kind: input, shape index: {}]   ;;  %s847_s2 = inlined_call_operand.vmem [shape: f32[8,1], index: 2, kind: input, shape index: {}]   ;;  %s848_s3 = inlined_call_operand.vmem [shape: f32[2,4,256], index: 3, kind: input, shape index: {}]   ;;  %s849_s4 = inlined_call_operand.hbm [shape: f32[2,8,256], index: 4, kind: output, shape index: {}]  }
   0x1   :  { %11 = vsyncpa [#allocation3 + $0x1], 0  ;;  %s724_s15 = smov 0   ;;  %s726_s16 = smov 0  }
   0x2   :  { %s728_s17 = smov 0   ;;  %s730_s18 = smov 0  }
   0x3   :  { %s732_s19 = smov 0   ;;  %s734_s20 = smov 0  }
   0x4 LB: > { %s536_s21 = sadd.s32 4294967295, %s694_s20   ;;  %s537_s22 = sadd.s32 4294967294, %s694_s20   ;;  %s694_s20 = sphi %s734_s20, %s17_s20   ;;  %s690_s19 = sphi %s732_s19, %s856_s19   ;;  %s686_s18 = sphi %s730_s18, %s855_s18   ;;  %s682_s17 = sphi %s728_s17, %s854_s17   ;;  %s678_s16 = sphi %s726_s16, %s853_s16   ;;  %s674_s15 = sphi %s724_s15, %s852_s15  }
   0x5   : > { %s36_s23 = sadd.s32 1, %s690_s19  ;;  %s153_s24 = sadd.s32 1, %s682_s17 }
   0x6   : > { %p38_p0 = scmp.ge.s32.totalorder %s36_s23, 2  ;;  %p163_p1 = scmp.ne.s32.totalorder %s682_s17, %s678_s16 }
   0x7   : > { %p164_p2 = scmp.eq.s32.totalorder %s536_s21, 1  ;;  %p169_p3 = scmp.ne.s32.totalorder %s678_s16, %s674_s15 }
   0x8   : > { %s858_s23 = smov (%p38_p0, %s36_s23), 0  ;;  %p170_p5 = scmp.eq.s32.totalorder %s537_s22, 1 }
   0x9   : > { %p764_p4 = por %p164_p2, %p163_p1  ;;  %s146_s26 = ssub.s32 %s690_s19, %s858_s23 }
   0xa   : > { %p543_p6 = scmp.ge.s32.totalorder %s694_s20, 1  ;;  %p151_p7 = scmp.eq.s32.totalorder %s146_s26, 0 }
   0xb   : > { %p771_p8 = por %p170_p5, %p169_p3  ;;  %p222_p9 = scmp.lt.s32.totalorder %s694_s20, 3 }
   0xc   : > { %s777_s28 = scalar_select %p151_p7, %s682_s17, %s153_s24  }
   0xd   : > { %p223_p10 = pnand %p543_p6, %p222_p9 }
   0xe   : > { %p277_p11 = scmp.lt.s32.totalorder (!%p223_p10), %s686_s18, 1  ;;  %v696_v0 = vmov (!%p223_p10), 0.0   ;;  %v697_v1 = vmov (!%p223_p10), 0   ;;  %v371_v2 = vld [vmem:[%s846_s1] sm:$0xff] (!%p223_p10)  ;;  %vm295_vm0 = vcmask (!%p223_p10), 1043456   ;;  %vm291_vm1 = vcmask (!%p223_p10), 31744  }
   0xf   : > { %226 = sbr.rel (%p223_p10) target bundleno = 264 (0x108), region = 36  ;;  %364 = vmatprep.mubr.f32.mxu0 (!%p223_p10), %v696_v0  ;;  %614 = vset.pattern.permute.xlu0 (!%p223_p10), %v697_v1  ;;  %v379_v3 = vld [vmem:[%s847_s2] sm:$0xff] (!%p223_p10)  ;;  %s261_s14 = sand.u32 (!%p223_p10), 1, %s678_s16  }
  0x10   : > { %374 = vperm.xlu0 (!%p223_p10), %614, %v371_v2   ;;  %v287_v6 = vld [vmem:[%s845_s0] sm:$0xff] (!%p223_p10)  ;;  %s544_s21 = sshll.u32 (!%p223_p10), %s261_s14, 4  ;;  %s556_s22 = sshll.u32 (!%p223_p10), %s686_s18, 8 }
  0x11   : > { %s263_s24 = scalar_lea.vmem (!%p223_p10), [#allocation2], %s544_s21  ;;  %s392_s6 = scalar_lea.sflag (!%p223_p10), [#allocation3], %s261_s14 }
  0x12   : > { %s410_s26 = sshll.u32 (!%p223_p10), %s263_s24, 4  ;;  %s800_s26 = int_to_ptr.vmem [resolvable:$true] %s410_s26 }
  0x13   : > { %s616_s7 = scalar_lea.vmem (!%p223_p10), %s800_s26, 256 }
  0x14   : > { %382 = vperm.xlu0 (!%p223_p10), %614, %v379_v3   ;;  %p617_p12 = scmp.ne.s32.totalorder (!%p223_p10), %s800_s26, %s616_s7 }
  0x16   : > { %s278_s5 = scalar_select %p277_p11, %s686_s18, 1 }
  0x17   : > { %p618_p13 = pnand %p617_p12, %p764_p4  ;;  %s698_s18 = smov [#allocation2]  }
  0x18   : > { %s555_s8 = sshll.u32 %s278_s5, 3  ;;  %s798_s5 = scalar_lea.hbm %s849_s4, %s556_s22 }
  0x19   : > { %s284_s11 = scalar_lea.vmem %s848_s3, %s555_s8  ;;  %p619_p0 = pneg %p618_p13 }
  0x1a   : > { %v288_v4 = vld [vmem:[%s284_s11] sm:$0xff]  ;;  %s620_s8 = sshll.u32 %s698_s18, 4  ;;  %s621_s8 = int_to_ptr.vmem [resolvable:$false] %s620_s8 }
  0x1b   : > { %v290_v5 = vcombine.high %v288_v4, %v288_v4  ;;  %s622_s9 = scalar_lea.vmem %s621_s8, 512  ;;  %p623_p1 = scmp.lt.s32.totalorder %s800_s26, %s621_s8 }
  0x1c   : > { %p624_p2 = scmp.lt.s32.totalorder %s622_s9, %s616_s7 }
  0x1d   : > { %547 = vmatprep.subr.msk.mxu0 %vm295_vm0, %v290_v5 }
  0x1e   : > { %548 = vmatpush1.msk.msra.mxu0 %vm295_vm0, %v288_v4  ;;  %p625_p3 = por %p624_p2, %p623_p1 }
  0x1f   : > { %549 = vmatmul.mubr.msk.f32.vlgmr.msra.gmra.mrb[0].mxu0 %vm291_vm1, %v287_v6 }
  0x20   : > { %p626_p5 = pnand %p625_p3, %p619_p0 }
  0x8f   : > { %v375_v7 = vpop.permute.xlu0 %374 }
  0x93   : > { %v383_v11 = vpop.permute.xlu0 %382 }
  0xf2   : > { %v366_v8 = vpop.f32.mrb[0].mxu0 }
  0xf3   : > { %v377_v9 = vmul.f32 %v375_v7, %v366_v8  ;;  %v368_v10 = vpop.f32.mrb[1].mxu0 }
  0xf4   : > { %v378_v12 = vmul.f32 %v375_v7, %v368_v10 }
  0xf5   : > { %v385_v13 = vadd.f32 %v383_v11, %v377_v9 }
  0xf6   : > { %v386_v14 = vadd.f32 %v383_v11, %v378_v12 }
  0xf7   : > { %v387_v15 = vmax.f32 %v385_v13, 0.0 }
  0xf8   : > { %v388_v16 = vmax.f32 %v386_v14, 0.0 }
  0xf9   : > { %389 = vst [vmem:[%s263_s24] sm:$0xff] %v387_v15 }
  0xfa   : > { %390 = vst [vmem:[%s263_s24 + $0x8] sm:$0xff] %v388_v16 }
  0xfb   : > { %629 = shalt.err (!%p626_p5)
}
  0xfc   : > { %s630_s10 = scalar_lea.hbm %s798_s5, 256  ;;  %s634_s13 = scalar_lea.hbm %s849_s4, 512 }
  0xfd   : > { %p631_p6 = scmp.ne.s32.totalorder %s798_s5, %s630_s10  ;;  %p635_p10 = scmp.lt.u32.totalorder %s798_s5, %s849_s4 }
  0xfe   : > { %p636_p11 = scmp.lt.u32.totalorder %s634_s13, %s630_s10  ;;  %p638_p13 = scmp.lt.u32.totalorder %s630_s10, %s798_s5 }
  0xff   : > { %p632_p7 = pnand %p631_p6, %p764_p4 }
 0x100   : > { %p637_p12 = por %p636_p11, %p635_p10 }
 0x101   : > { %p633_p9 = pneg %p632_p7 }
 0x102   : > { %p639_p0 = por %p638_p13, %p637_p12 }
 0x104   : > { %p640_p1 = pnand %p639_p0, %p633_p9 }
 0x106   : > { %643 = shalt.err (!%p640_p1)
}
 0x107   : > { %557 = dma.vmem_to_hbm [thread:$0]  (%p764_p4), %s800_s26, 256, %s798_s5, %s392_s6  }
 0x108 PF: > { %p563_p2 = scmp.ge.s32.totalorder %s694_s20, 2  ;;  %s422_s22 = sand.u32 1, %s674_s15  }
 0x109   : > { %s423_s24 = scalar_lea.sflag [#allocation3], %s422_s22 }
 0x10a   : > { %p560_p3 = pnand %p563_p2, %p771_p8 }
 0x10c   : > { %669 = dma.done.wait (!%p560_p3), %s423_s24, 256  }
 0x10d   : > { %671 = vsyncadd (!%p560_p3), %s423_s24, 4294967040  ;;  %s17_s20 = sadd.s32 1, %s694_s20   ;;  %s852_s15 = smov %s678_s16 }
 0x10e   : > { %p14_p5 = scmp.ge.s32.totalorder %s17_s20, 4   ;;  %s853_s16 = smov %s682_s17 }
 0x10f   : > { %s854_s17 = smov %s777_s28  ;;  %s855_s18 = smov %s690_s19 }
 0x110   : > { %s856_s19 = smov %s858_s23  ;;  %16 = sbr.rel (!%p14_p5) target bundleno = 4 (0x4), region = 80 }
 0x117   :  { %428 = vsyncpa [#allocation3], 1 }
 0x118   :  { %430 = vsyncpa [#allocation3 + $0x1], 1 }

</bundles_post_ra>
